<compile_context>
chip_gen: v5e
topology: v5e:2x2
jax: 0.10.0
libtpu: 0.0.40
codegen_flags: <defaults>
</compile_context>

<pallas_src>
import jax
import jax.numpy as jnp
from jax.experimental import pallas as pl
from jax.experimental.pallas import tpu as pltpu


def _make_coord_att_kernel(Nb, C, mip, oup, H, W, HWp):
    R = Nb * C
    inv_w = 1.0 / float(W)
    inv_h = 1.0 / float(H)

    def kernel(x_ref, pool_ref, expand_ref, packed_ref, out_ref):
        x = x_ref[...]                                            # (R, HWp) f32

        # --- pool_h + pool_w + concat: ONE bf16 MXU matmul against an exact
        # --- 0/1 selector matrix (no cross-lane XLU reductions).
        pooled = jnp.dot(x.astype(jnp.bfloat16), pool_ref[...],
                         preferred_element_type=jnp.float32)      # (R, H+W)

        # Exact mean scaling in f32 on the tiny pooled result.
        ph = pooled[:, :H] * inv_w                                # (R, H)  mean over W
        pw = pooled[:, H:] * inv_h                                # (R, W)  mean over H

        # Tiny relayouts (Nb, C, .) -> (C, Nb*.) so the 1x1 convs below are
        # single 2-D matmuls instead of Nb unrolled batched dots.
        ph2 = ph.reshape(Nb, C, H).transpose(1, 0, 2).reshape(C, Nb * H)
        pw2 = pw.reshape(Nb, C, W).transpose(1, 0, 2).reshape(C, Nb * W)

        p = packed_ref[...]
        w1 = p[0:mip, 0:C]                       # conv1 weight (BN folded in)
        b1 = p[0:mip, -1:]                       # (mip, 1)
        wh = p[mip:mip + oup, 0:mip]
        bh = p[mip:mip + oup, -1:]
        ww = p[mip + oup:mip + 2 * oup, 0:mip]
        bw = p[mip + oup:mip + 2 * oup, -1:]

        def hswish(v):                            # v * relu6(v + 3) / 6
            return v * jnp.clip(v + 3.0, 0.0, 6.0) * (1.0 / 6.0)

        # conv1 (+ folded BN) + h_swish; a 1x1 conv acts per column, so
        # applying it to the H-part and W-part separately == conv on concat.
        yh = hswish(jnp.dot(w1, ph2, preferred_element_type=jnp.float32) + b1)   # (mip, Nb*H)
        yw = hswish(jnp.dot(w1, pw2, preferred_element_type=jnp.float32) + b1)   # (mip, Nb*W)

        a_h = jax.nn.sigmoid(
            jnp.dot(wh, yh, preferred_element_type=jnp.float32) + bh)            # (oup, Nb*H)
        a_w = jax.nn.sigmoid(
            jnp.dot(ww, yw, preferred_element_type=jnp.float32) + bw)            # (oup, Nb*W)

        # Back to row-major (Nb*oup, .) so rows line up with x rows (oup == C);
        # cast to bf16 for the native-MXU expansion matmuls.
        a_h_r = a_h.reshape(oup, Nb, H).transpose(1, 0, 2).reshape(R, H).astype(jnp.bfloat16)
        a_w_r = a_w.reshape(oup, Nb, W).transpose(1, 0, 2).reshape(R, W).astype(jnp.bfloat16)

        # Broadcast a_h over W and a_w over H with exact 0/1 bf16 matrices on
        # the MXU; the two dots are issued back-to-back so the second one's
        # pushes overlap the first one's result drain.
        e = expand_ref[...]                                       # (H+W, HWp) bf16
        a_h_full = jnp.dot(a_h_r, e[:H, :], preferred_element_type=jnp.float32)  # (R, HWp)
        a_w_full = jnp.dot(a_w_r, e[H:, :], preferred_element_type=jnp.float32)  # (R, HWp)

        out_ref[...] = (x * a_h_full * a_w_full).astype(out_ref.dtype)

    return kernel


def _fold_bn_into_conv1(params, eps=1e-5):
    scale = params["gamma"][:, 0] * jax.lax.rsqrt(params["var"][:, 0] + eps)
    w1f = params["w1"] * scale[:, None]
    b1f = scale * (params["b1"][:, 0] - params["mean"][:, 0]) + params["beta"][:, 0]
    return w1f, b1f


def _pack_params(params, C, mip, oup):
    w1f, b1f = _fold_bn_into_conv1(params)
    cols = max(C, mip) + 1
    packed = jnp.zeros((mip + 2 * oup, cols), jnp.float32)
    packed = packed.at[:mip, :C].set(w1f)
    packed = packed.at[:mip, -1].set(b1f)
    packed = packed.at[mip:mip + oup, :mip].set(params["wh"])
    packed = packed.at[mip:mip + oup, -1].set(params["bh"][:, 0])
    packed = packed.at[mip + oup:, :mip].set(params["ww"])
    packed = packed.at[mip + oup:, -1].set(params["bw"][:, 0])
    return packed


def _pooling_matrix(H, W, HWp):
    # (HWp, H+W) 0/1 selector: first H cols sum over W (pool_h), last W sum
    # over H (pool_w).  Exact in bf16; the 1/W, 1/H scaling happens in-kernel.
    ph = jnp.repeat(jnp.eye(H, dtype=jnp.float32), W, axis=0)     # (HW, H)
    pw = jnp.tile(jnp.eye(W, dtype=jnp.float32), (H, 1))          # (HW, W)
    m = jnp.concatenate([ph, pw], axis=1)                         # (HW, H+W)
    if HWp != H * W:
        m = jnp.pad(m, ((0, HWp - H * W), (0, 0)))
    return m.astype(jnp.bfloat16)


def _expand_matrix(H, W, HWp):
    # (H+W, HWp) 0/1: rows 0..H-1 broadcast a_h over W; rows H.. broadcast a_w over H.
    bh = jnp.repeat(jnp.eye(H, dtype=jnp.float32), W, axis=1)     # (H, HW)
    bw = jnp.tile(jnp.eye(W, dtype=jnp.float32), (1, H))          # (W, HW)
    m = jnp.concatenate([bh, bw], axis=0)
    if HWp != H * W:
        m = jnp.pad(m, ((0, 0), (0, HWp - H * W)))
    return m.astype(jnp.bfloat16)


def _pick_image_block(N, C, HWp, itemsize, target_bytes, min_grid_steps=2):
    # Largest Nb that divides N, keeps the x block's row dim (Nb*C) aligned to
    # the dtype's sublane multiple (unless the block covers all of N), leaves
    # >= min_grid_steps grid steps when possible (v7x shards the "parallel"
    # grid axis across its 2 TensorCores), and keeps the DMA tile near the
    # target size.
    sub = max(8, 32 // itemsize)          # f32: 8, bf16: 16, int8/fp8: 32
    cands = [nb for nb in range(1, N + 1)
             if N % nb == 0 and (nb == N or (nb * C) % sub == 0)]
    multi = [nb for nb in cands if N // nb >= min_grid_steps]
    pool = multi if multi else cands
    under = [nb for nb in pool if nb * C * HWp * itemsize <= target_bytes]
    return max(under) if under else min(pool)


def coord_att(x, params, *, block_target_bytes=1 << 20, min_grid_steps=2):
    N, C, H, W = x.shape
    mip = params["w1"].shape[0]
    oup = params["wh"].shape[0]
    if oup != C:
        raise ValueError(f"CoordAtt broadcast multiply needs oup == inp "
                         f"(got oup={oup}, inp={C}).")
    HW = H * W
    HWp = ((HW + 127) // 128) * 128                  # lane-dense writeback for any H*W

    x2d = x.reshape(N * C, HW)                       # (N*C, HW), free reshape
    if HWp != HW:
        x2d = jnp.pad(x2d, ((0, 0), (0, HWp - HW)))

    Nb = _pick_image_block(N, C, HWp, x.dtype.itemsize, block_target_bytes,
                           min_grid_steps)
    R = Nb * C

    packed = _pack_params(params, C, mip, oup)
    pool_mat = _pooling_matrix(H, W, HWp)            # (HWp, H+W) bf16
    expand_mat = _expand_matrix(H, W, HWp)           # (H+W, HWp) bf16

    # VMEM budget: x + out double-buffered, ~3 block-size f32 temps inside the
    # body (a_h_full, a_w_full, product), plus the constants; clamp well under
    # v7x's 64 MiB physical VMEM.
    block_bytes = R * HWp * x.dtype.itemsize
    const_bytes = 2 * ((pool_mat.size + expand_mat.size) * 2 + packed.size * 4)
    est = 4 * block_bytes + 3 * R * HWp * 4 + const_bytes + (2 << 20)
    vmem_limit = int(min(48 << 20, max(32 << 20, est)))

    kernel = _make_coord_att_kernel(Nb, C, mip, oup, H, W, HWp)

    out2d = pl.pallas_call(
        kernel,
        out_shape=jax.ShapeDtypeStruct((N * C, HWp), x.dtype),
        grid=(N // Nb,),
        in_specs=[
            pl.BlockSpec((R, HWp), lambda i: (i, 0)),            # x block
            pl.BlockSpec(pool_mat.shape, lambda i: (0, 0)),      # pooling selector
            pl.BlockSpec(expand_mat.shape, lambda i: (0, 0)),    # expansion selector
            pl.BlockSpec(packed.shape, lambda i: (0, 0)),        # packed params
        ],
        out_specs=pl.BlockSpec((R, HWp), lambda i: (i, 0)),
        compiler_params=pltpu.CompilerParams(
            dimension_semantics=("parallel",),
            vmem_limit_bytes=vmem_limit),
    )(x2d, pool_mat, expand_mat, packed)

    if HWp != HW:
        out2d = out2d[:, :HW]
    return out2d.reshape(N, C, H, W)


def init_params(key, inp, oup, reduction=32):
    mip = max(8, inp // reduction)
    k1, k2, k3 = jax.random.split(key, 3)
    # kaiming_normal_(mode='fan_in', nonlinearity='relu'): std = sqrt(2 / fan_in)
    w1 = jax.random.normal(k1, (mip, inp), jnp.float32) * jnp.sqrt(2.0 / inp)
    wh = jax.random.normal(k2, (oup, mip), jnp.float32) * jnp.sqrt(2.0 / mip)
    ww = jax.random.normal(k3, (oup, mip), jnp.float32) * jnp.sqrt(2.0 / mip)
    return dict(
        w1=w1, b1=jnp.zeros((mip, 1), jnp.float32),
        gamma=jnp.ones((mip, 1), jnp.float32), beta=jnp.zeros((mip, 1), jnp.float32),
        mean=jnp.zeros((mip, 1), jnp.float32), var=jnp.ones((mip, 1), jnp.float32),
        wh=wh, bh=jnp.zeros((oup, 1), jnp.float32),
        ww=ww, bw=jnp.zeros((oup, 1), jnp.float32),
    )


def coord_att_reference(x, p):
    # Pure-JAX f32 reference (inference-form BN) for correctness checking.
    eps = 1e-5
    N, C, H, W = x.shape
    x_h = jnp.mean(x, axis=3)                      # (N, C, H)
    x_w = jnp.mean(x, axis=2)                      # (N, C, W)
    y = jnp.concatenate([x_h, x_w], axis=2)        # (N, C, H+W)
    y = jnp.einsum("mc,ncl->nml", p["w1"], y) + p["b1"][None]
    y = (y - p["mean"][None]) / jnp.sqrt(p["var"][None] + eps) * p["gamma"][None] + p["beta"][None]
    y = y * jnp.clip(y + 3.0, 0.0, 6.0) / 6.0
    yh, yw = y[:, :, :H], y[:, :, H:]
    a_h = jax.nn.sigmoid(jnp.einsum("om,nml->nol", p["wh"], yh) + p["bh"][None])  # (N, oup, H)
    a_w = jax.nn.sigmoid(jnp.einsum("om,nml->nol", p["ww"], yw) + p["bw"][None])  # (N, oup, W)
    return x * a_h[:, :, :, None] * a_w[:, :, None, :]


if __name__ == "__main__":
    key = jax.random.PRNGKey(0)
    kx, kp = jax.random.split(key)

    N, C, H, W = 2, 4, 16, 16          # inp = oup = 4, mip = max(8, 4//32) = 8
    x = jax.random.normal(kx, (N, C, H, W), jnp.float32)
    params = init_params(kp, inp=C, oup=C, reduction=32)

    out = jax.block_until_ready(coord_att(x, params))
    ref = coord_att_reference(x, params)

    assert out.shape == (N, C, H, W)
    # Tolerance covers bf16 rounding of the MXU operands (x on the pooling
    # path, a_h/a_w on the expansion path) vs. the pure-f32 reference.
    assert jnp.allclose(out, ref, atol=3e-2, rtol=3e-2), "mismatch vs reference"

    print("KERNEL_OK")
</pallas_src>

<mosaic_0001>
module attributes {stable_mosaic.version = 11 : i64} {
  func.func @kernel(%arg0: i32, %arg1: memref<8x256xf32, #tpu.memory_space<vmem>>, %arg2: memref<256x32xbf16, #tpu.memory_space<vmem>>, %arg3: memref<32x256xbf16, #tpu.memory_space<vmem>>, %arg4: memref<16x9xf32, #tpu.memory_space<vmem>>, %arg5: memref<8x256xf32, #tpu.memory_space<vmem>>) attributes {dimension_semantics = [#tpu.dimension_semantics<parallel>], iteration_bounds = array<i64: 1>, scalar_prefetch = 0 : i64, scratch_operands = 0 : i64, tpu.core_type = #tpu.core_type<tc>, window_params = [{transform_indices = @transform_0, window_bounds = array<i64: 8, 256>}, {pipeline_mode = #tpu.pipeline_mode<synchronous>, transform_indices = @transform_1, window_bounds = array<i64: 256, 32>}, {pipeline_mode = #tpu.pipeline_mode<synchronous>, transform_indices = @transform_2, window_bounds = array<i64: 32, 256>}, {pipeline_mode = #tpu.pipeline_mode<synchronous>, transform_indices = @transform_3, window_bounds = array<i64: 16, 9>}, {transform_indices = @transform_4, window_bounds = array<i64: 8, 256>}]} {
    %c0 = arith.constant 0 : index
    %c0_0 = arith.constant 0 : index
    %0 = vector.load %arg1[%c0, %c0_0] : memref<8x256xf32, #tpu.memory_space<vmem>>, vector<8x256xf32>
    %1 = arith.truncf %0 : vector<8x256xf32> to vector<8x256xbf16>
    %c0_1 = arith.constant 0 : index
    %c0_2 = arith.constant 0 : index
    %2 = vector.load %arg2[%c0_1, %c0_2] : memref<256x32xbf16, #tpu.memory_space<vmem>>, vector<256x32xbf16>
    %cst = arith.constant dense<0.000000e+00> : vector<8x32xf32>
    %3 = tpu.matmul %1, %2, %cst {dimension_numbers = #tpu.dot_dimension_numbers<[1], [0], [0], [1], [0, 0, 1, 1], [], []>} : vector<8x256xbf16>, vector<256x32xbf16>, vector<8x32xf32> -> vector<8x32xf32>
    %4 = vector.extract_strided_slice %3 {offsets = [0, 0], sizes = [8, 16], strides = [1, 1]} : vector<8x32xf32> to vector<8x16xf32>
    %cst_3 = arith.constant 6.250000e-02 : f32
    %5 = vector.broadcast %cst_3 : f32 to vector<8x16xf32>
    %6 = arith.mulf %4, %5 : vector<8x16xf32>
    %7 = vector.extract_strided_slice %3 {offsets = [0, 16], sizes = [8, 16], strides = [1, 1]} : vector<8x32xf32> to vector<8x16xf32>
    %cst_4 = arith.constant 6.250000e-02 : f32
    %8 = vector.broadcast %cst_4 : f32 to vector<8x16xf32>
    %9 = arith.mulf %7, %8 : vector<8x16xf32>
    %10 = vector.shape_cast %6 : vector<8x16xf32> to vector<2x4x16xf32>
    %11 = tpu.transpose %10, [1, 0, 2] : vector<2x4x16xf32> -> vector<4x2x16xf32>
    %12 = vector.shape_cast %11 : vector<4x2x16xf32> to vector<4x32xf32>
    %13 = vector.shape_cast %9 : vector<8x16xf32> to vector<2x4x16xf32>
    %14 = tpu.transpose %13, [1, 0, 2] : vector<2x4x16xf32> -> vector<4x2x16xf32>
    %15 = vector.shape_cast %14 : vector<4x2x16xf32> to vector<4x32xf32>
    %c0_5 = arith.constant 0 : index
    %c0_6 = arith.constant 0 : index
    %16 = vector.load %arg4[%c0_5, %c0_6] : memref<16x9xf32, #tpu.memory_space<vmem>>, vector<16x9xf32>
    %17 = vector.extract_strided_slice %16 {offsets = [0, 0], sizes = [8, 4], strides = [1, 1]} : vector<16x9xf32> to vector<8x4xf32>
    %18 = vector.extract_strided_slice %16 {offsets = [0, 8], sizes = [8, 1], strides = [1, 1]} : vector<16x9xf32> to vector<8x1xf32>
    %19 = vector.extract_strided_slice %16 {offsets = [8, 0], sizes = [4, 8], strides = [1, 1]} : vector<16x9xf32> to vector<4x8xf32>
    %20 = vector.extract_strided_slice %16 {offsets = [8, 8], sizes = [4, 1], strides = [1, 1]} : vector<16x9xf32> to vector<4x1xf32>
    %21 = vector.extract_strided_slice %16 {offsets = [12, 0], sizes = [4, 8], strides = [1, 1]} : vector<16x9xf32> to vector<4x8xf32>
    %22 = vector.extract_strided_slice %16 {offsets = [12, 8], sizes = [4, 1], strides = [1, 1]} : vector<16x9xf32> to vector<4x1xf32>
    %cst_7 = arith.constant dense<0.000000e+00> : vector<8x32xf32>
    %23 = tpu.matmul %17, %12, %cst_7 {dimension_numbers = #tpu.dot_dimension_numbers<[1], [0], [0], [1], [0, 0, 1, 1], [], []>} : vector<8x4xf32>, vector<4x32xf32>, vector<8x32xf32> -> vector<8x32xf32>
    %24 = vector.broadcast %18 : vector<8x1xf32> to vector<8x32xf32>
    %25 = arith.addf %23, %24 : vector<8x32xf32>
    %cst_8 = arith.constant 3.000000e+00 : f32
    %26 = vector.broadcast %cst_8 : f32 to vector<8x32xf32>
    %27 = arith.addf %25, %26 : vector<8x32xf32>
    %cst_9 = arith.constant 0.000000e+00 : f32
    %cst_10 = arith.constant 6.000000e+00 : f32
    %28 = vector.broadcast %cst_9 : f32 to vector<8x32xf32>
    %29 = arith.maximumf %28, %27 : vector<8x32xf32>
    %30 = vector.broadcast %cst_10 : f32 to vector<8x32xf32>
    %31 = arith.minimumf %30, %29 : vector<8x32xf32>
    %32 = arith.mulf %25, %31 : vector<8x32xf32>
    %cst_11 = arith.constant 0.166666672 : f32
    %33 = vector.broadcast %cst_11 : f32 to vector<8x32xf32>
    %34 = arith.mulf %32, %33 : vector<8x32xf32>
    %cst_12 = arith.constant dense<0.000000e+00> : vector<8x32xf32>
    %35 = tpu.matmul %17, %15, %cst_12 {dimension_numbers = #tpu.dot_dimension_numbers<[1], [0], [0], [1], [0, 0, 1, 1], [], []>} : vector<8x4xf32>, vector<4x32xf32>, vector<8x32xf32> -> vector<8x32xf32>
    %36 = vector.broadcast %18 : vector<8x1xf32> to vector<8x32xf32>
    %37 = arith.addf %35, %36 : vector<8x32xf32>
    %cst_13 = arith.constant 3.000000e+00 : f32
    %38 = vector.broadcast %cst_13 : f32 to vector<8x32xf32>
    %39 = arith.addf %37, %38 : vector<8x32xf32>
    %cst_14 = arith.constant 0.000000e+00 : f32
    %cst_15 = arith.constant 6.000000e+00 : f32
    %40 = vector.broadcast %cst_14 : f32 to vector<8x32xf32>
    %41 = arith.maximumf %40, %39 : vector<8x32xf32>
    %42 = vector.broadcast %cst_15 : f32 to vector<8x32xf32>
    %43 = arith.minimumf %42, %41 : vector<8x32xf32>
    %44 = arith.mulf %37, %43 : vector<8x32xf32>
    %cst_16 = arith.constant 0.166666672 : f32
    %45 = vector.broadcast %cst_16 : f32 to vector<8x32xf32>
    %46 = arith.mulf %44, %45 : vector<8x32xf32>
    %cst_17 = arith.constant dense<0.000000e+00> : vector<4x32xf32>
    %47 = tpu.matmul %19, %34, %cst_17 {dimension_numbers = #tpu.dot_dimension_numbers<[1], [0], [0], [1], [0, 0, 1, 1], [], []>} : vector<4x8xf32>, vector<8x32xf32>, vector<4x32xf32> -> vector<4x32xf32>
    %48 = vector.broadcast %20 : vector<4x1xf32> to vector<4x32xf32>
    %49 = arith.addf %47, %48 : vector<4x32xf32>
    %50 = arith.negf %49 : vector<4x32xf32>
    %51 = math.exp %50 : vector<4x32xf32>
    %cst_18 = arith.constant 1.000000e+00 : f32
    %52 = vector.broadcast %cst_18 : f32 to vector<4x32xf32>
    %53 = arith.addf %52, %51 : vector<4x32xf32>
    %54 = arith.divf %52, %53 : vector<4x32xf32>
    %cst_19 = arith.constant dense<0.000000e+00> : vector<4x32xf32>
    %55 = tpu.matmul %21, %46, %cst_19 {dimension_numbers = #tpu.dot_dimension_numbers<[1], [0], [0], [1], [0, 0, 1, 1], [], []>} : vector<4x8xf32>, vector<8x32xf32>, vector<4x32xf32> -> vector<4x32xf32>
    %56 = vector.broadcast %22 : vector<4x1xf32> to vector<4x32xf32>
    %57 = arith.addf %55, %56 : vector<4x32xf32>
    %58 = arith.negf %57 : vector<4x32xf32>
    %59 = math.exp %58 : vector<4x32xf32>
    %cst_20 = arith.constant 1.000000e+00 : f32
    %60 = vector.broadcast %cst_20 : f32 to vector<4x32xf32>
    %61 = arith.addf %60, %59 : vector<4x32xf32>
    %62 = arith.divf %60, %61 : vector<4x32xf32>
    %63 = vector.shape_cast %54 : vector<4x32xf32> to vector<4x2x16xf32>
    %64 = tpu.transpose %63, [1, 0, 2] : vector<4x2x16xf32> -> vector<2x4x16xf32>
    %65 = vector.shape_cast %64 : vector<2x4x16xf32> to vector<8x16xf32>
    %66 = arith.truncf %65 : vector<8x16xf32> to vector<8x16xbf16>
    %67 = vector.shape_cast %62 : vector<4x32xf32> to vector<4x2x16xf32>
    %68 = tpu.transpose %67, [1, 0, 2] : vector<4x2x16xf32> -> vector<2x4x16xf32>
    %69 = vector.shape_cast %68 : vector<2x4x16xf32> to vector<8x16xf32>
    %70 = arith.truncf %69 : vector<8x16xf32> to vector<8x16xbf16>
    %c0_21 = arith.constant 0 : index
    %c0_22 = arith.constant 0 : index
    %71 = vector.load %arg3[%c0_21, %c0_22] : memref<32x256xbf16, #tpu.memory_space<vmem>>, vector<32x256xbf16>
    %72 = vector.extract_strided_slice %71 {offsets = [0, 0], sizes = [16, 256], strides = [1, 1]} : vector<32x256xbf16> to vector<16x256xbf16>
    %cst_23 = arith.constant dense<0.000000e+00> : vector<8x256xf32>
    %73 = tpu.matmul %66, %72, %cst_23 {dimension_numbers = #tpu.dot_dimension_numbers<[1], [0], [0], [1], [0, 0, 1, 1], [], []>} : vector<8x16xbf16>, vector<16x256xbf16>, vector<8x256xf32> -> vector<8x256xf32>
    %74 = vector.extract_strided_slice %71 {offsets = [16, 0], sizes = [16, 256], strides = [1, 1]} : vector<32x256xbf16> to vector<16x256xbf16>
    %cst_24 = arith.constant dense<0.000000e+00> : vector<8x256xf32>
    %75 = tpu.matmul %70, %74, %cst_24 {dimension_numbers = #tpu.dot_dimension_numbers<[1], [0], [0], [1], [0, 0, 1, 1], [], []>} : vector<8x16xbf16>, vector<16x256xbf16>, vector<8x256xf32> -> vector<8x256xf32>
    %76 = arith.mulf %0, %73 : vector<8x256xf32>
    %77 = arith.mulf %76, %75 : vector<8x256xf32>
    %c0_25 = arith.constant 0 : index
    %c0_26 = arith.constant 0 : index
    %78 = vector.load %arg5[%c0_25, %c0_26] : memref<8x256xf32, #tpu.memory_space<vmem>>, vector<8x256xf32>
    tpu.vector_store %arg5[%c0_25, %c0_26], %77 {strides = array<i32>} : memref<8x256xf32, #tpu.memory_space<vmem>>, vector<8x256xf32>,
    return
  }
  func.func @transform_0(%arg0: i32) -> (i32, i32) {
    %c0_i32 = arith.constant 0 : i32
    %c0_i32_0 = arith.constant 0 : i32
    return %arg0, %c0_i32 : i32, i32
  }
  func.func @transform_1(%arg0: i32) -> (i32, i32) {
    %c0_i32 = arith.constant 0 : i32
    %c0_i32_0 = arith.constant 0 : i32
    %c0_i32_1 = arith.constant 0 : i32
    return %c0_i32, %c0_i32_0 : i32, i32
  }
  func.func @transform_2(%arg0: i32) -> (i32, i32) {
    %c0_i32 = arith.constant 0 : i32
    %c0_i32_0 = arith.constant 0 : i32
    %c0_i32_1 = arith.constant 0 : i32
    return %c0_i32, %c0_i32_0 : i32, i32
  }
  func.func @transform_3(%arg0: i32) -> (i32, i32) {
    %c0_i32 = arith.constant 0 : i32
    %c0_i32_0 = arith.constant 0 : i32
    %c0_i32_1 = arith.constant 0 : i32
    return %c0_i32, %c0_i32_0 : i32, i32
  }
  func.func @transform_4(%arg0: i32) -> (i32, i32) {
    %c0_i32 = arith.constant 0 : i32
    %c0_i32_0 = arith.constant 0 : i32
    return %arg0, %c0_i32 : i32, i32
  }
}

</mosaic_0001>

<bundles_post_ra>
// kernel: tpu_custom_call.1
= control target key start
LH: loop header
LB: loop body
LE: loop exit
PB: predicated region body
PF: predicated region fallthrough
CT: control target
= control target key end

     0   :  { %s1019_s0 = inlined_call_operand.vmem [shape: f32[8,256], index: 0, kind: input, shape index: {}]   ;;  %s1020_s1 = inlined_call_operand.vmem [shape: bf16[256,32], index: 1, kind: input, shape index: {}]   ;;  %s1021_s2 = inlined_call_operand.vmem [shape: bf16[32,256], index: 2, kind: input, shape index: {}]   ;;  %s1022_s3 = inlined_call_operand.vmem [shape: f32[16,9], index: 3, kind: input, shape index: {}]   ;;  %s1023_s4 = inlined_call_operand.hbm [shape: f32[8,256], index: 4, kind: output, shape index: {}]  }
   0x1   :  { %v760_v0 = vld [vmem:[%s1020_s1 + $0x38] sm:$0xff]  ;;  %v759_v2 = vld [vmem:[%s1020_s1 + $0x30] sm:$0xff]  ;;  %v758_v4 = vld [vmem:[%s1020_s1 + $0x28] sm:$0xff] }
   0x2   :  { %v768_v1 = vld [vmem:[%s1020_s1 + $0x78] sm:$0xff]  ;;  %151 = vmatpush.bf16.msra.mxu0 %v760_v0  ;;  %v767_v3 = vld [vmem:[%s1020_s1 + $0x70] sm:$0xff]  ;;  %v766_v5 = vld [vmem:[%s1020_s1 + $0x68] sm:$0xff] }
   0x3   :  { %164 = vmatpush.bf16.msra.mxu1 %v768_v1 }
   0x6   :  { %152 = vmatpush.bf16.msra.mxu0 %v759_v2 }
   0x7   :  { %165 = vmatpush.bf16.msra.mxu1 %v767_v3 }
   0x8   :  { %9 = vsyncpa [#allocation3], 0  ;;  %v757_v6 = vld [vmem:[%s1020_s1 + $0x20] sm:$0xff]  ;;  %v756_v8 = vld [vmem:[%s1020_s1 + $0x18] sm:$0xff]  ;;  %v815_v20 = vmov 1983009808  }
   0x9   :  { %v765_v7 = vld [vmem:[%s1020_s1 + $0x60] sm:$0xff]  ;;  %v764_v9 = vld [vmem:[%s1020_s1 + $0x58] sm:$0xff]  ;;  %v755_v10 = vld [vmem:[%s1020_s1 + $0x10] sm:$0xff]  ;;  %v181_v21 = vunpack.c.l.s4 %v815_v20  ;;  %v816_v26 = vmov 1934713408   ;;  %vm190_vm0 = vcmask 1047556  }
   0xa   :  { %153 = vmatpush.bf16.msra.mxu0 %v758_v4  ;;  %v763_v11 = vld [vmem:[%s1020_s1 + $0x50] sm:$0xff]  ;;  %v754_v12 = vld [vmem:[%s1020_s1 + $0x8] sm:$0xff]  ;;  %v753_v14 = vld [vmem:[%s1020_s1] sm:$0xff]  ;;  %v195_v27 = vunpack.c.l.s4 %v816_v26  ;;  %v819_v59 = vmov 8   ;;  %vm231_vm1 = vcmask 130048   ;;  %vm299_vm2 = vcmask 1043456  }
   0xb   :  { %166 = vmatpush.bf16.msra.mxu1 %v766_v5  ;;  %v762_v13 = vld [vmem:[%s1020_s1 + $0x48] sm:$0xff]  ;;  %v761_v15 = vld [vmem:[%s1020_s1 + $0x40] sm:$0xff]  ;;  %v908_v25 = vunpack.c.0.s8 %v181_v21  ;;  %s818_s1 = smov 16   ;;  %779 = vset.pattern.permute.xlu2 %v819_v59  ;;  %vm296_vm3 = vcmask 31744   ;;  %vm361_vm4 = vcmask 64512   ;;  %s652_s21 = sshll.u32 %s1023_s4, 4  ;;  %s653_s21 = int_to_ptr.hbm [resolvable:$true] %s652_s21 }
   0xc   :  { %v897_v16 = vld [vmem:[%s1019_s0] sm:$0xff]  ;;  %v902_v17 = vld [vmem:[%s1019_s0 + $0x8] sm:$0xff]  ;;  %s817_s0 = smov 112   ;;  %v912_v31 = vunpack.c.0.s8 %v195_v27  ;;  %780 = vset.pattern.permute.xlu0 %v819_v59 }
   0xd   :  { %v21_v18 = vpack.c.bf16 %v897_v16, %v897_v16  ;;  %v22_v19 = vpack.c.bf16 %v902_v17, %v902_v17  ;;  %v289_v58 = vld [vmem:[%s1022_s3] sm:$0xff] }
   0xe   :  { %154 = vmatpush.bf16.msra.mxu0 %v757_v6  ;;  %293 = vperm.xlu2 %779, %v289_v58  }
   0xf   :  { %167 = vmatpush.bf16.msra.mxu1 %v765_v7 }
  0x12   :  { %155 = vmatpush.bf16.msra.mxu0 %v756_v8 }
  0x13   :  { %168 = vmatpush.bf16.msra.mxu1 %v764_v9 }
  0x16   :  { %156 = vmatpush.bf16.msra.mxu0 %v755_v10 }
  0x17   :  { %169 = vmatpush.bf16.msra.mxu1 %v763_v11 }
  0x1a   :  { %157 = vmatpush.bf16.msra.mxu0 %v754_v12 }
  0x1b   :  { %170 = vmatpush.bf16.msra.mxu1 %v762_v13 }
  0x1e   :  { %158 = vmatpush.bf16.msra.mxu0 %v753_v14 }
  0x1f   :  { %171 = vmatpush.bf16.msra.mxu1 %v761_v15 }
  0x21   :  { %159 = vmatmul.bf16.vlgmr.msra.gmra.mxu0 %v21_v18 }
  0x22   :  { %172 = vmatmul.bf16.vlgmr.msra.gmra.mxu1 %v22_v19 }
  0x68   :  { %v294_v27 = vpop.permute.xlu2 %293 }
  0x9e   :  { %v160_v22 = vpop.f32.mrf.mxu0 }
  0x9f   :  { %v173_v23 = vpop.f32.mrf.mxu1 }
  0xa0   :  { %v174_v24 = vadd.f32 %v173_v23, %v160_v22  ;;  %v290_v23 = vld [vmem:[%s1022_s3 + $0x8] sm:$0xff] }
  0xa1   :  { %358 = vperm.xlu2 %779, %v290_v23  }
  0xa2   :  { %v177_v28 = vmul.f32 0.0625, %v174_v24 }
  0xa4   :  { %v183_v29 = vperm.slane %v177_v28, %v908_v25  ;;  %233 = vrot.lane.b32.xlu0 %v177_v28, %s817_s0  ;;  %v179_v30 = vrot.slane %v177_v28, 4 }
  0xa6   :  { %v192_v32 = vrot.slane %v183_v29, 4  ;;  %v188_v33 = vperm.slane %v179_v30, %v908_v25  ;;  %v162_v34 = vpop.f32.mrf.mxu0 }
  0xa7   :  { %v175_v35 = vpop.f32.mrf.mxu1 }
  0xa8   :  { %v189_v36 = vrot.slane %v188_v33, 4  ;;  %v193_v37 = vsel %vm190_vm0, %v188_v33, %v192_v32 }
  0xa9   :  { %v201_v38 = vperm.slane %v193_v37, %v912_v31 }
  0xaa   :  { %v191_v39 = vsel %vm190_vm0, %v189_v36, %v183_v29 }
  0xab   :  { %v197_v40 = vperm.slane %v191_v39, %v912_v31  ;;  %v204_v41 = vrot.slane %v201_v38, 4 }
  0xac   :  { %235 = vrot.lane.b32.xlu0 %v179_v30, %s817_s0 }
  0xad   :  { %v202_v42 = vrot.slane %v197_v40, 4  ;;  %v205_v43 = vsel %vm190_vm0, 0.0, %v204_v41  ;;  %v206_v46 = vsel %vm190_vm0, %v204_v41, %v197_v40 }
  0xae   :  { %v211_v44 = vrot.slane %v205_v43, 4  ;;  %v210_v49 = vperm.slane %v206_v46, %v908_v25 }
  0xaf   :  { %v203_v45 = vsel %vm190_vm0, 0.0, %v202_v42  ;;  %v403_v42 = vrot.slane %v290_v23, 4 }
  0xb0   :  { %v212_v47 = vsel %vm190_vm0, %v211_v44, %v203_v45 }
  0xb1   :  { %v216_v48 = vperm.slane %v212_v47, %v908_v25 }
  0xb3   :  { %v217_v50 = vrot.slane %v216_v48, 4 }
  0xb5   :  { %v218_v51 = vsel %vm190_vm0, %v217_v50, %v210_v49 }
  0xb6   :  { %v222_v52 = vperm.slane %v218_v51, %v912_v31 }
  0xb8   :  { %v223_v53 = vrot.slane %v222_v52, 4 }
  0xba   :  { %v224_v54 = vsel %vm190_vm0, 0.0, %v223_v53 }
  0xbb   :  { %226 = vst [vmem:[#allocation1] ss:$2 sm:$0xff] %v224_v54 }
  0xc2   :  { %v227_v55 = vld.sshfl [vmem:[#allocation1] sm:$0xff pattern:$0x75316420] }
  0xc3   :  { %228 = vrot.lane.b32.xlu1 %v227_v55, %s818_s1 }
  0xfb   :  { %v359_v44 = vpop.permute.xlu2 %358 }
 0x116   :  { %v234_v56 = vpop.permute.xlu0 %233 }
 0x117   :  { %v241_v57 = vperm.slane %v234_v56, %v908_v25 }
 0x119   :  { %v249_v61 = vrot.slane %v241_v57, 4 }
 0x11e   :  { %v236_v60 = vpop.permute.xlu0 %235 }
 0x11f   :  { %v246_v62 = vperm.slane %v236_v60, %v908_v25  ;;  %v404_v60 = vrot.slane %v359_v44, 4 }
 0x121   :  { %v247_v63 = vrot.slane %v246_v62, 4  ;;  %v250_v0 = vsel %vm190_vm0, %v246_v62, %v249_v61 }
 0x122   :  { %v258_v1 = vperm.slane %v250_v0, %v912_v31 }
 0x123   :  { %v248_v2 = vsel %vm190_vm0, %v247_v63, %v241_v57 }
 0x124   :  { %v254_v3 = vperm.slane %v248_v2, %v912_v31  ;;  %v261_v4 = vrot.slane %v258_v1, 4  ;;  %v735_v2 = vld [vmem:[%s1021_s2] sm:$0xf] }
 0x126   :  { %v259_v5 = vrot.slane %v254_v3, 4  ;;  %v262_v6 = vsel %vm190_vm0, 0.0, %v261_v4  ;;  %v263_v9 = vsel %vm190_vm0, %v261_v4, %v254_v3  ;;  %v770_v3 = vld [vmem:[%s1021_s2 + $0x4] sm:$0xf0]  ;;  %v769_v4 = vld [vmem:[%s1021_s2 + $0x4] sm:$0xf] }
 0x127   :  { %v268_v7 = vrot.slane %v262_v6, 4  ;;  %v267_v12 = vperm.slane %v263_v9, %v908_v25  ;;  %v736_v6 = vor.u32 %v770_v3, %v735_v2 }
 0x128   :  { %v260_v8 = vsel %vm190_vm0, 0.0, %v259_v5  ;;  %v737_v5 = vld [vmem:[%s1021_s2 + $0x8] sm:$0xf0] }
 0x129   :  { %v269_v10 = vsel %vm190_vm0, %v268_v7, %v260_v8  ;;  %v740_v7 = vor.u32 %v769_v4, %v737_v5 }
 0x12a   :  { %v273_v11 = vperm.slane %v269_v10, %v908_v25 }
 0x12c   :  { %v274_v13 = vrot.slane %v273_v11, 4 }
 0x12e   :  { %v275_v14 = vsel %vm190_vm0, %v274_v13, %v267_v12 }
 0x12f   :  { %v279_v15 = vperm.slane %v275_v14, %v912_v31 }
 0x131   :  { %v280_v18 = vrot.slane %v279_v15, 4 }
 0x133   :  { %v281_v19 = vsel %vm190_vm0, 0.0, %v280_v18 }
 0x134   :  { %283 = vst [vmem:[#allocation1] ss:$2 sm:$0xff] %v281_v19 }
 0x135   :  { %v229_v20 = vpop.permute.xlu1 %228 }
 0x136   :  { %v232_v21 = vsel %vm231_vm1, %v222_v52, %v229_v20 }
 0x137   :  { %725 = vmatpush.msk.msra.mxu2 %vm299_vm2, %v232_v21 }
 0x138   :  { %726 = vmatmul.msk.f32.vlgmr.msra.gmra.mxu2 %vm296_vm3, %v289_v58 }
 0x13b   :  { %v284_v22 = vld.sshfl [vmem:[#allocation1] sm:$0xff pattern:$0x75316420] }
 0x13c   :  { %285 = vrot.lane.b32.xlu1 %v284_v22, %s818_s1 }
 0x1ae   :  { %v286_v24 = vpop.permute.xlu1 %285 }
 0x1af   :  { %v288_v26 = vsel %vm231_vm1, %v279_v15, %v286_v24 }
 0x1b0   :  { %727 = vmatpush.msk.msra.mxu3 %vm299_vm2, %v288_v26 }
 0x1b1   :  { %728 = vmatmul.msk.f32.vlgmr.msra.gmra.mxu3 %vm296_vm3, %v289_v58 }
 0x1bb   :  { %v320_v28 = vpop.f32.mrf.mxu2 }
 0x1bc   :  { %v321_v29 = vadd.f32 %v320_v28, %v294_v27 }
 0x1be   :  { %v323_v30 = vadd.f32 3.0, %v321_v29 }
 0x1c0   :  { %v324_v32 = vmax.f32 %v323_v30, 0.0 }
 0x1c2   :  { %v325_v33 = vmin.f32 %v324_v32, 6.0 }
 0x1c4   :  { %v326_v34 = vmul.f32 %v325_v33, %v321_v29 }
 0x1c6   :  { %v327_v35 = vmul.f32 0.16666667, %v326_v34 }
 0x1c8   :  { %379 = vmatpush.msrb.mxu2 %v327_v35 }
 0x1c9   :  { %729 = vmatmul.msk.f32.vlgmr.msrb.gmra.mxu2 %vm361_vm4, %v290_v23 }
 0x1ca   :  { %581 = vmatpush.bf16.msra.mxu2 %v736_v6 }
 0x234   :  { %v348_v36 = vpop.f32.mrf.mxu3 }
 0x235   :  { %v349_v37 = vadd.f32 %v348_v36, %v294_v27 }
 0x237   :  { %v351_v38 = vadd.f32 3.0, %v349_v37 }
 0x239   :  { %v352_v39 = vmax.f32 %v351_v38, 0.0 }
 0x23b   :  { %v353_v40 = vmin.f32 %v352_v39, 6.0 }
 0x23d   :  { %v354_v41 = vmul.f32 %v353_v40, %v349_v37 }
 0x23f   :  { %v355_v43 = vmul.f32 0.16666667, %v354_v41 }
 0x241   :  { %423 = vmatpush.msrb.mxu3 %v355_v43 }
 0x242   :  { %731 = vmatmul.msk.f32.vlgmr.msrb.gmra.mxu3 %vm361_vm4, %v403_v42 }
 0x243   :  { %594 = vmatpush.bf16.msra.mxu3 %v740_v7 }
 0x24c   :  { %v381_v45 = vpop.f32.mrf.mxu2 }
 0x24d   :  { %v382_v46 = vadd.f32 %v381_v45, %v359_v44 }
 0x24f   :  { %v730_v47 = vmul.f32 -1.442695, %v382_v46 }
 0x251   :  { %781 = vpow2.f32 %v730_v47  ;;  %v745_v47 = vld [vmem:[%s1021_s2 + $0x10] sm:$0xf] }
 0x257   :  { %v782_v48 = vpop.eup %781 }
 0x258   :  { %v387_v49 = vadd.f32 1.0, %v782_v48  ;;  %v772_v48 = vld [vmem:[%s1021_s2 + $0x14] sm:$0xf0] }
 0x25a   :  { %783 = vrcp.f32 %v387_v49  ;;  %v399_v53 = vand.u32 2147483648, %v387_v49  ;;  %v397_v55 = vand.u32 2147483647, %v387_v49  ;;  %vm393_vm6 = vweird.f32 %v387_v49 }
 0x25c   :  { %v400_v57 = vor.u32 1.1754944e-38, %v399_v53  ;;  %vm398_vm8 = vcmp.eq.f32.partialorder %v397_v55, 8.507059e+37 }
 0x260   :  { %v784_v50 = vpop.eup %783 }
 0x261   :  { %v389_v51 = vmul.f32 %v784_v50, %v387_v49  ;;  %vm394_vm5 = vweird.f32 %v784_v50  ;;  %v771_v49 = vld [vmem:[%s1021_s2 + $0x14] sm:$0xf] }
 0x262   :  { %vm395_vm7 = vmor %vm393_vm6, %vm394_vm5 }
 0x263   :  { %v390_v52 = vsub.f32 1.0, %v389_v51  ;;  %v747_v51 = vld [vmem:[%s1021_s2 + $0x18] sm:$0xf0]  ;;  %s820_s2 = smov [#allocation2]  }
 0x264   :  { %s650_s18 = sshll.u32 %s820_s2, 4  ;;  %s651_s18 = int_to_ptr.vmem [resolvable:$true] %s650_s18 }
 0x265   :  { %v391_v54 = vmul.f32 %v784_v50, %v390_v52  ;;  %v750_v52 = vor.u32 %v771_v49, %v747_v51 }
 0x267   :  { %v392_v56 = vadd.f32 %v784_v50, %v391_v54  ;;  %633 = vmatpush.bf16.msrb.mxu3 %v750_v52 }
 0x269   :  { %v396_v58 = vsel %vm395_vm7, %v784_v50, %v392_v56  ;;  %v746_v50 = vor.u32 %v772_v48, %v745_v47 }
 0x26a   :  { %v401_v59 = vsel %vm398_vm8, %v400_v57, %v396_v58 }
 0x26b   :  { %448 = vrot.lane.b32.xlu0 %v401_v59, %s817_s0  ;;  %v453_v9 = vperm.slane %v401_v59, %v908_v25  ;;  %620 = vmatpush.bf16.msrb.mxu2 %v746_v50 }
 0x26d   :  { %v461_v12 = vrot.slane %v453_v9, 4 }
 0x2c5   :  { %v425_v61 = vpop.f32.mrf.mxu3 }
 0x2c6   :  { %v426_v62 = vadd.f32 %v425_v61, %v404_v60 }
 0x2c8   :  { %v732_v63 = vmul.f32 -1.442695, %v426_v62 }
 0x2ca   :  { %785 = vpow2.f32 %v732_v63 }
 0x2d0   :  { %v786_v0 = vpop.eup %785 }
 0x2d1   :  { %v431_v1 = vadd.f32 1.0, %v786_v0 }
 0x2d3   :  { %787 = vrcp.f32 %v431_v1  ;;  %v443_v14 = vand.u32 2147483648, %v431_v1  ;;  %v441_v19 = vand.u32 2147483647, %v431_v1  ;;  %vm437_vm10 = vweird.f32 %v431_v1 }
 0x2d5   :  { %v444_v24 = vor.u32 1.1754944e-38, %v443_v14  ;;  %vm442_vm12 = vcmp.eq.f32.partialorder %v441_v19, 8.507059e+37 }
 0x2d9   :  { %v788_v8 = vpop.eup %787 }
 0x2da   :  { %v433_v10 = vmul.f32 %v788_v8, %v431_v1  ;;  %vm438_vm9 = vweird.f32 %v788_v8 }
 0x2db   :  { %vm439_vm11 = vmor %vm437_vm10, %vm438_vm9 }
 0x2dc   :  { %v434_v11 = vsub.f32 1.0, %v433_v10 }
 0x2dd   :  { %v449_v13 = vpop.permute.xlu0 %448 }
 0x2de   :  { %v458_v15 = vperm.slane %v449_v13, %v908_v25  ;;  %v435_v18 = vmul.f32 %v788_v8, %v434_v11 }
 0x2e0   :  { %v459_v20 = vrot.slane %v458_v15, 4  ;;  %v462_v21 = vsel %vm190_vm0, %v458_v15, %v461_v12  ;;  %v436_v22 = vadd.f32 %v788_v8, %v435_v18 }
 0x2e1   :  { %v470_v23 = vperm.slane %v462_v21, %v912_v31 }
 0x2e2   :  { %v460_v26 = vsel %vm190_vm0, %v459_v20, %v453_v9  ;;  %v440_v27 = vsel %vm439_vm11, %v788_v8, %v436_v22 }
 0x2e3   :  { %v466_v28 = vperm.slane %v460_v26, %v912_v31  ;;  %v473_v29 = vrot.slane %v470_v23, 4  ;;  %v445_v30 = vsel %vm442_vm12, %v444_v24, %v440_v27 }
 0x2e4   :  { %503 = vrot.lane.b32.xlu1 %v445_v30, %s817_s0  ;;  %v508_v53 = vperm.slane %v445_v30, %v908_v25 }
 0x2e5   :  { %v471_v32 = vrot.slane %v466_v28, 4  ;;  %v474_v33 = vsel %vm190_vm0, 0.0, %v473_v29  ;;  %v475_v36 = vsel %vm190_vm0, %v473_v29, %v466_v28 }
 0x2e6   :  { %v480_v34 = vrot.slane %v474_v33, 4  ;;  %v479_v39 = vperm.slane %v475_v36, %v908_v25  ;;  %v516_v55 = vrot.slane %v508_v53, 4 }
 0x2e7   :  { %v472_v35 = vsel %vm190_vm0, 0.0, %v471_v32 }
 0x2e8   :  { %v481_v37 = vsel %vm190_vm0, %v480_v34, %v472_v35 }
 0x2e9   :  { %v485_v38 = vperm.slane %v481_v37, %v908_v25 }
 0x2eb   :  { %v486_v40 = vrot.slane %v485_v38, 4 }
 0x2ed   :  { %v487_v41 = vsel %vm190_vm0, %v486_v40, %v479_v39 }
 0x2ee   :  { %v491_v42 = vperm.slane %v487_v41, %v912_v31 }
 0x2f0   :  { %v492_v43 = vrot.slane %v491_v42, 4  ;;  %496 = vst [vmem:[#allocation1] ss:$2 sm:$0xff] %v491_v42 }
 0x2f2   :  { %v493_v44 = vsel %vm190_vm0, 0.0, %v492_v43 }
 0x2f3   :  { %498 = vst [vmem:[#allocation1 + $0x1] ss:$2 sm:$0xff] %v493_v44 }
 0x2fa   :  { %v499_v45 = vld.sshfl [vmem:[#allocation1] sm:$0xff pattern:$0x75316420] }
 0x2fb   :  { %v501_v46 = vpack.c.bf16 %v499_v45, %v499_v45 }
 0x2fd   :  { %741 = vmatmul.msk.bf16.vlgmr.msra.gmra.mxu2 %vm231_vm1, %v501_v46  ;;  %742 = vmatmul.msk.bf16.vlgmr.msra.gmra.mxu3 %vm231_vm1, %v501_v46 }
 0x356   :  { %v504_v54 = vpop.permute.xlu1 %503 }
 0x357   :  { %v513_v56 = vperm.slane %v504_v54, %v908_v25 }
 0x359   :  { %v514_v57 = vrot.slane %v513_v56, 4  ;;  %v517_v58 = vsel %vm190_vm0, %v513_v56, %v516_v55 }
 0x35a   :  { %v525_v59 = vperm.slane %v517_v58, %v912_v31 }
 0x35b   :  { %v515_v60 = vsel %vm190_vm0, %v514_v57, %v508_v53 }
 0x35c   :  { %v521_v61 = vperm.slane %v515_v60, %v912_v31  ;;  %v528_v62 = vrot.slane %v525_v59, 4 }
 0x35e   :  { %v526_v63 = vrot.slane %v521_v61, 4  ;;  %v529_v0 = vsel %vm190_vm0, 0.0, %v528_v62  ;;  %v530_v3 = vsel %vm190_vm0, %v528_v62, %v521_v61 }
 0x35f   :  { %v535_v1 = vrot.slane %v529_v0, 4  ;;  %v534_v6 = vperm.slane %v530_v3, %v908_v25 }
 0x360   :  { %v527_v2 = vsel %vm190_vm0, 0.0, %v526_v63 }
 0x361   :  { %v536_v4 = vsel %vm190_vm0, %v535_v1, %v527_v2 }
 0x362   :  { %v540_v5 = vperm.slane %v536_v4, %v908_v25 }
 0x364   :  { %v541_v7 = vrot.slane %v540_v5, 4 }
 0x366   :  { %v542_v8 = vsel %vm190_vm0, %v541_v7, %v534_v6 }
 0x367   :  { %v546_v9 = vperm.slane %v542_v8, %v912_v31 }
 0x369   :  { %v547_v10 = vrot.slane %v546_v9, 4  ;;  %551 = vst [vmem:[#allocation1] ss:$2 sm:$0xff] %v546_v9 }
 0x36b   :  { %v548_v11 = vsel %vm190_vm0, 0.0, %v547_v10 }
 0x36c   :  { %553 = vst [vmem:[#allocation1 + $0x1] ss:$2 sm:$0xff] %v548_v11 }
 0x373   :  { %v554_v12 = vld.sshfl [vmem:[#allocation1] sm:$0xff pattern:$0x75316420] }
 0x374   :  { %v556_v13 = vpack.c.bf16 %v554_v12, %v554_v12 }
 0x376   :  { %751 = vmatmul.msk.bf16.vlgmr.msrb.gmra.mxu2 %vm231_vm1, %v556_v13  ;;  %752 = vmatmul.msk.bf16.vlgmr.msrb.gmra.mxu3 %vm231_vm1, %v556_v13 }
 0x380   :  { %v583_v14 = vpop.f32.mrf.mxu2  ;;  %v596_v15 = vpop.f32.mrf.mxu3 }
 0x381   :  { %v639_v19 = vmul.f32 %v583_v14, %v897_v16  ;;  %v640_v20 = vmul.f32 %v596_v15, %v902_v17 }
 0x388   :  { %v585_v18 = vpop.f32.mrf.mxu2  ;;  %v598_v25 = vpop.f32.mrf.mxu3 }
 0x3f9   :  { %v622_v31 = vpop.f32.mrf.mxu2  ;;  %v635_v21 = vpop.f32.mrf.mxu3 }
 0x3fa   :  { %v641_v22 = vmul.f32 %v639_v19, %v622_v31  ;;  %v642_v23 = vmul.f32 %v640_v20, %v635_v21 }
 0x3fc   :  { %643 = vst [vmem:[#allocation2] sm:$0xff] %v641_v22 }
 0x3fd   :  { %644 = vst [vmem:[#allocation2 + $0x8] sm:$0xff] %v642_v23 }
 0x3fe   :  { %655 = dma.vmem_to_hbm [thread:$0]  %s651_s18, 256, %s653_s21, [#allocation3]  }
 0x401   :  { %v624_v24 = vpop.f32.mrf.mxu2  ;;  %v637_v26 = vpop.f32.mrf.mxu3 }
 0x402   :  { %813 = dma.done.wait [#allocation3], 256  }
 0x403   :  { %814 = vsyncadd [#allocation3], 4294967040 }
 0x404   :  { %660 = vsyncpa [#allocation3], 1 }

</bundles_post_ra>
